<compile_context>
chip_gen: v6e
topology: v6e:2x2x1
jax: 0.10.0
libtpu: 0.0.40
codegen_flags: <defaults>
</compile_context>

<pallas_src>
import functools

import jax
import jax.numpy as jnp
from jax.experimental import pallas as pl
from jax.experimental.pallas import tpu as pltpu


# ----------------------------- kernel ---------------------------------------
def _dual_mlp_kernel(*refs, num_hidden):
    """refs = (si, sj, ti, tj, w1a, w1b, w1c, w1d, b1,
               [w_h, b_h] * (num_hidden - 1), w_out, b_out, o_ref)

    Feature-major layout: embeddings are [embed_dim, block_n], the hidden state
    is [hidden, block_n], the output tile is [out_c, block_n].  Weights stay in
    PyTorch (out_features, in_features) layout so each layer is h' = W @ h + b
    with b an (out_features, 1) column broadcast across lanes.
    """
    si, sj, ti, tj = (r[...] for r in refs[0:4])
    w1a, w1b, w1c, w1d = (r[...] for r in refs[4:8])
    b1 = refs[8][...]
    mid_refs = refs[9:-3]
    w_out = refs[-3][...]
    b_out = refs[-2][...]
    o_ref = refs[-1]

    cdt = w1a.dtype  # bf16 MXU-operand dtype (accumulation is f32 below)

    # layer 1: the concat is folded into four accumulating MXU matmuls
    h = (jnp.dot(w1a, si, preferred_element_type=jnp.float32)
         + jnp.dot(w1b, sj, preferred_element_type=jnp.float32)
         + jnp.dot(w1c, ti, preferred_element_type=jnp.float32)
         + jnp.dot(w1d, tj, preferred_element_type=jnp.float32))
    h = jnp.maximum(h + b1, 0.0)          # f32 bias add + ReLU (VPU)
    # dropout: identity in inference

    # middle hidden layers
    for l in range(num_hidden - 1):
        w = mid_refs[2 * l][...]
        b = mid_refs[2 * l + 1][...]
        h = jnp.dot(w, h.astype(cdt), preferred_element_type=jnp.float32) + b
        h = jnp.maximum(h, 0.0)

    # output layer + sigmoid (EUP exp + approximate EUP reciprocal)
    logits = jnp.dot(w_out, h.astype(cdt),
                     preferred_element_type=jnp.float32) + b_out
    sig = pl.reciprocal(1.0 + jnp.exp(-logits), approx=True)
    o_ref[...] = sig.astype(o_ref.dtype)


# ----------------------------- wrapper ---------------------------------------
@functools.partial(jax.jit, static_argnames=("block_n", "compute_dtype"))
def dual_mlp_score(s_i, s_j, t_i, t_j, params, *,
                   block_n=512, compute_dtype=jnp.bfloat16):
    """DualMLPScore forward (inference).

    s_i, s_j, t_i, t_j : [N, embed_dim] float32 (module's layout).
    params             : tuple of (W, b) per Linear in PyTorch layout,
                         W: (out_features, in_features), b: (out_features,).
    Returns [N, out_channels] float32.
    """
    assert len(params) >= 2, "num_layers == 1 path not implemented"
    assert block_n % 128 == 0

    (w1, b1), *mid_layers, (w_out, b_out) = params
    n, e = s_i.shape
    hidden = w1.shape[0]
    out_c = w_out.shape[0]
    assert w1.shape[1] == 4 * e

    # Pad the batch to a multiple of block_n (ragged N supported; padding is
    # sliced off at the end).
    n_pad = ((n + block_n - 1) // block_n) * block_n
    pad = n_pad - n

    def prep(x):  # -> feature-major [embed_dim, n_pad] bf16 MXU operand
        xt = x.T.astype(compute_dtype)
        if pad:
            xt = jnp.pad(xt, ((0, 0), (0, pad)))
        return xt

    si_t, sj_t, ti_t, tj_t = prep(s_i), prep(s_j), prep(t_i), prep(t_j)

    # Split W1 along its input axis so the kernel never concatenates.
    w1_blocks = [w1[:, k * e:(k + 1) * e].astype(compute_dtype)
                 for k in range(4)]
    weight_args = [*w1_blocks, b1.reshape(hidden, 1).astype(jnp.float32)]
    for (w, b) in mid_layers:
        weight_args += [w.astype(compute_dtype),
                        b.reshape(-1, 1).astype(jnp.float32)]
    weight_args += [w_out.astype(compute_dtype),
                    b_out.reshape(out_c, 1).astype(jnp.float32)]

    grid = (n_pad // block_n,)
    emb_spec = pl.BlockSpec((e, block_n), lambda i: (0, i))
    full = lambda a: pl.BlockSpec(a.shape, lambda i: (0, 0))

    out_t = pl.pallas_call(
        functools.partial(_dual_mlp_kernel, num_hidden=len(params) - 1),
        out_shape=jax.ShapeDtypeStruct((out_c, n_pad), jnp.float32),
        grid_spec=pltpu.PrefetchScalarGridSpec(
            num_scalar_prefetch=0,
            grid=grid,
            in_specs=[emb_spec] * 4 + [full(a) for a in weight_args],
            out_specs=pl.BlockSpec((out_c, block_n), lambda i: (0, i)),
        ),
        compiler_params=pltpu.CompilerParams(
            dimension_semantics=("parallel",)),
    )(si_t, sj_t, ti_t, tj_t, *weight_args)

    # Back to the module's [N, out_channels] orientation (layout plumbing only).
    return out_t[:, :n].T


# ----------------------------- reference --------------------------------------
def _reference(s_i, s_j, t_i, t_j, params):
    x = jnp.concatenate([s_i, s_j, t_i, t_j], axis=-1)
    *hidden_layers, (w_out, b_out) = params
    for (w, b) in hidden_layers:
        x = jax.nn.relu(x @ w.T + b)
    return jax.nn.sigmoid(x @ w_out.T + b_out)


# ----------------------------- main -------------------------------------------
if __name__ == "__main__":
    # config mirroring args.*:
    #   embed_dim=8 -> in_channels=32, hidden_predictor=32,
    #   outdim_predictor=1, nlayer_predictor=3
    embed_dim = 8
    in_channels = 4 * embed_dim
    hidden = 32
    out_channels = 1
    num_layers = 3
    n_pairs = 1000          # intentionally ragged (padded internally to 1024)
    block_n = 512

    key = jax.random.PRNGKey(0)
    keys = jax.random.split(key, 4 + 2 * num_layers)

    s_i = jax.random.normal(keys[0], (n_pairs, embed_dim), jnp.float32)
    s_j = jax.random.normal(keys[1], (n_pairs, embed_dim), jnp.float32)
    t_i = jax.random.normal(keys[2], (n_pairs, embed_dim), jnp.float32)
    t_j = jax.random.normal(keys[3], (n_pairs, embed_dim), jnp.float32)

    def init_linear(kw, kb, fan_in, fan_out):  # torch.nn.Linear layout (out, in)
        bound = 1.0 / jnp.sqrt(fan_in)
        w = jax.random.uniform(kw, (fan_out, fan_in), jnp.float32, -bound, bound)
        b = jax.random.uniform(kb, (fan_out,), jnp.float32, -bound, bound)
        return w, b

    dims = [in_channels] + [hidden] * (num_layers - 1) + [out_channels]
    params = tuple(
        init_linear(keys[4 + 2 * l], keys[5 + 2 * l], dims[l], dims[l + 1])
        for l in range(num_layers))

    out = dual_mlp_score(s_i, s_j, t_i, t_j, params, block_n=block_n)
    out = jax.block_until_ready(out)

    ref = _reference(s_i, s_j, t_i, t_j, params)
    assert out.shape == (n_pairs, out_channels)
    # bf16 MXU operands + approximate reciprocal => tolerance well above the
    # expected ~3e-3 max deviation on sigmoid outputs.
    assert jnp.allclose(out, ref, atol=2e-2, rtol=0.0), "mismatch vs reference"

    print("KERNEL_OK")
</pallas_src>

<mosaic_0001>
module attributes {stable_mosaic.version = 11 : i64} {
  func.func @_dual_mlp_kernel(%arg0: i32, %arg1: memref<8x512xbf16, #tpu.memory_space<vmem>>, %arg2: memref<8x512xbf16, #tpu.memory_space<vmem>>, %arg3: memref<8x512xbf16, #tpu.memory_space<vmem>>, %arg4: memref<8x512xbf16, #tpu.memory_space<vmem>>, %arg5: memref<32x8xbf16, #tpu.memory_space<vmem>>, %arg6: memref<32x8xbf16, #tpu.memory_space<vmem>>, %arg7: memref<32x8xbf16, #tpu.memory_space<vmem>>, %arg8: memref<32x8xbf16, #tpu.memory_space<vmem>>, %arg9: memref<32x1xf32, #tpu.memory_space<vmem>>, %arg10: memref<32x32xbf16, #tpu.memory_space<vmem>>, %arg11: memref<32x1xf32, #tpu.memory_space<vmem>>, %arg12: memref<1x32xbf16, #tpu.memory_space<vmem>>, %arg13: memref<1x1xf32, #tpu.memory_space<vmem>>, %arg14: memref<1x512xf32, #tpu.memory_space<vmem>>) attributes {dimension_semantics = [#tpu.dimension_semantics<parallel>], iteration_bounds = array<i64: 2>, scalar_prefetch = 0 : i64, scratch_operands = 0 : i64, tpu.core_type = #tpu.core_type<tc>, window_params = [{transform_indices = @transform_0, window_bounds = array<i64: 8, 512>}, {transform_indices = @transform_1, window_bounds = array<i64: 8, 512>}, {transform_indices = @transform_2, window_bounds = array<i64: 8, 512>}, {transform_indices = @transform_3, window_bounds = array<i64: 8, 512>}, {pipeline_mode = #tpu.pipeline_mode<synchronous>, transform_indices = @transform_4, window_bounds = array<i64: 32, 8>}, {pipeline_mode = #tpu.pipeline_mode<synchronous>, transform_indices = @transform_5, window_bounds = array<i64: 32, 8>}, {pipeline_mode = #tpu.pipeline_mode<synchronous>, transform_indices = @transform_6, window_bounds = array<i64: 32, 8>}, {pipeline_mode = #tpu.pipeline_mode<synchronous>, transform_indices = @transform_7, window_bounds = array<i64: 32, 8>}, {pipeline_mode = #tpu.pipeline_mode<synchronous>, transform_indices = @transform_8, window_bounds = array<i64: 32, 1>}, {pipeline_mode = #tpu.pipeline_mode<synchronous>, transform_indices = @transform_9, window_bounds = array<i64: 32, 32>}, {pipeline_mode = #tpu.pipeline_mode<synchronous>, transform_indices = @transform_10, window_bounds = array<i64: 32, 1>}, {pipeline_mode = #tpu.pipeline_mode<synchronous>, transform_indices = @transform_11, window_bounds = array<i64: 1, 32>}, {pipeline_mode = #tpu.pipeline_mode<synchronous>, transform_indices = @transform_12, window_bounds = array<i64: 1, 1>}, {transform_indices = @transform_13, window_bounds = array<i64: 1, 512>}]} {
    %c0 = arith.constant 0 : index
    %c0_0 = arith.constant 0 : index
    %0 = vector.load %arg1[%c0, %c0_0] : memref<8x512xbf16, #tpu.memory_space<vmem>>, vector<8x512xbf16>
    %c0_1 = arith.constant 0 : index
    %c0_2 = arith.constant 0 : index
    %1 = vector.load %arg2[%c0_1, %c0_2] : memref<8x512xbf16, #tpu.memory_space<vmem>>, vector<8x512xbf16>
    %c0_3 = arith.constant 0 : index
    %c0_4 = arith.constant 0 : index
    %2 = vector.load %arg3[%c0_3, %c0_4] : memref<8x512xbf16, #tpu.memory_space<vmem>>, vector<8x512xbf16>
    %c0_5 = arith.constant 0 : index
    %c0_6 = arith.constant 0 : index
    %3 = vector.load %arg4[%c0_5, %c0_6] : memref<8x512xbf16, #tpu.memory_space<vmem>>, vector<8x512xbf16>
    %c0_7 = arith.constant 0 : index
    %c0_8 = arith.constant 0 : index
    %4 = vector.load %arg5[%c0_7, %c0_8] : memref<32x8xbf16, #tpu.memory_space<vmem>>, vector<32x8xbf16>
    %c0_9 = arith.constant 0 : index
    %c0_10 = arith.constant 0 : index
    %5 = vector.load %arg6[%c0_9, %c0_10] : memref<32x8xbf16, #tpu.memory_space<vmem>>, vector<32x8xbf16>
    %c0_11 = arith.constant 0 : index
    %c0_12 = arith.constant 0 : index
    %6 = vector.load %arg7[%c0_11, %c0_12] : memref<32x8xbf16, #tpu.memory_space<vmem>>, vector<32x8xbf16>
    %c0_13 = arith.constant 0 : index
    %c0_14 = arith.constant 0 : index
    %7 = vector.load %arg8[%c0_13, %c0_14] : memref<32x8xbf16, #tpu.memory_space<vmem>>, vector<32x8xbf16>
    %c0_15 = arith.constant 0 : index
    %c0_16 = arith.constant 0 : index
    %8 = vector.load %arg9[%c0_15, %c0_16] : memref<32x1xf32, #tpu.memory_space<vmem>>, vector<32x1xf32>
    %c0_17 = arith.constant 0 : index
    %c0_18 = arith.constant 0 : index
    %9 = vector.load %arg12[%c0_17, %c0_18] : memref<1x32xbf16, #tpu.memory_space<vmem>>, vector<1x32xbf16>
    %c0_19 = arith.constant 0 : index
    %c0_20 = arith.constant 0 : index
    %10 = vector.load %arg13[%c0_19, %c0_20] : memref<1x1xf32, #tpu.memory_space<vmem>>, vector<1x1xf32>
    %cst = arith.constant dense<0.000000e+00> : vector<32x512xf32>
    %11 = tpu.matmul %4, %0, %cst {dimension_numbers = #tpu.dot_dimension_numbers<[1], [0], [0], [1], [0, 0, 1, 1], [], []>} : vector<32x8xbf16>, vector<8x512xbf16>, vector<32x512xf32> -> vector<32x512xf32>
    %cst_21 = arith.constant dense<0.000000e+00> : vector<32x512xf32>
    %12 = tpu.matmul %5, %1, %cst_21 {dimension_numbers = #tpu.dot_dimension_numbers<[1], [0], [0], [1], [0, 0, 1, 1], [], []>} : vector<32x8xbf16>, vector<8x512xbf16>, vector<32x512xf32> -> vector<32x512xf32>
    %13 = arith.addf %11, %12 : vector<32x512xf32>
    %cst_22 = arith.constant dense<0.000000e+00> : vector<32x512xf32>
    %14 = tpu.matmul %6, %2, %cst_22 {dimension_numbers = #tpu.dot_dimension_numbers<[1], [0], [0], [1], [0, 0, 1, 1], [], []>} : vector<32x8xbf16>, vector<8x512xbf16>, vector<32x512xf32> -> vector<32x512xf32>
    %15 = arith.addf %13, %14 : vector<32x512xf32>
    %cst_23 = arith.constant dense<0.000000e+00> : vector<32x512xf32>
    %16 = tpu.matmul %7, %3, %cst_23 {dimension_numbers = #tpu.dot_dimension_numbers<[1], [0], [0], [1], [0, 0, 1, 1], [], []>} : vector<32x8xbf16>, vector<8x512xbf16>, vector<32x512xf32> -> vector<32x512xf32>
    %17 = arith.addf %15, %16 : vector<32x512xf32>
    %18 = vector.broadcast %8 : vector<32x1xf32> to vector<32x512xf32>
    %19 = arith.addf %17, %18 : vector<32x512xf32>
    %cst_24 = arith.constant 0.000000e+00 : f32
    %20 = vector.broadcast %cst_24 : f32 to vector<32x512xf32>
    %21 = arith.maximumf %19, %20 : vector<32x512xf32>
    %c0_25 = arith.constant 0 : index
    %c0_26 = arith.constant 0 : index
    %22 = vector.load %arg10[%c0_25, %c0_26] : memref<32x32xbf16, #tpu.memory_space<vmem>>, vector<32x32xbf16>
    %c0_27 = arith.constant 0 : index
    %c0_28 = arith.constant 0 : index
    %23 = vector.load %arg11[%c0_27, %c0_28] : memref<32x1xf32, #tpu.memory_space<vmem>>, vector<32x1xf32>
    %24 = arith.truncf %21 : vector<32x512xf32> to vector<32x512xbf16>
    %cst_29 = arith.constant dense<0.000000e+00> : vector<32x512xf32>
    %25 = tpu.matmul %22, %24, %cst_29 {dimension_numbers = #tpu.dot_dimension_numbers<[1], [0], [0], [1], [0, 0, 1, 1], [], []>} : vector<32x32xbf16>, vector<32x512xbf16>, vector<32x512xf32> -> vector<32x512xf32>
    %26 = vector.broadcast %23 : vector<32x1xf32> to vector<32x512xf32>
    %27 = arith.addf %25, %26 : vector<32x512xf32>
    %cst_30 = arith.constant 0.000000e+00 : f32
    %28 = vector.broadcast %cst_30 : f32 to vector<32x512xf32>
    %29 = arith.maximumf %27, %28 : vector<32x512xf32>
    %30 = arith.truncf %29 : vector<32x512xf32> to vector<32x512xbf16>
    %cst_31 = arith.constant dense<0.000000e+00> : vector<1x512xf32>
    %31 = tpu.matmul %9, %30, %cst_31 {dimension_numbers = #tpu.dot_dimension_numbers<[1], [0], [0], [1], [0, 0, 1, 1], [], []>} : vector<1x32xbf16>, vector<32x512xbf16>, vector<1x512xf32> -> vector<1x512xf32>
    %32 = vector.broadcast %10 : vector<1x1xf32> to vector<1x512xf32>
    %33 = arith.addf %31, %32 : vector<1x512xf32>
    %cst_32 = arith.constant 0.000000e+00 : f32
    %34 = vector.broadcast %cst_32 : f32 to vector<1x512xf32>
    %35 = arith.subf %34, %33 : vector<1x512xf32>
    %36 = math.exp %35 : vector<1x512xf32>
    %cst_33 = arith.constant 1.000000e+00 : f32
    %37 = vector.broadcast %cst_33 : f32 to vector<1x512xf32>
    %38 = arith.addf %37, %36 : vector<1x512xf32>
    %39 = tpu.reciprocal %38 {approx = true} : vector<1x512xf32> -> vector<1x512xf32>
    %c0_34 = arith.constant 0 : index
    %c0_35 = arith.constant 0 : index
    %40 = vector.load %arg14[%c0_34, %c0_35] : memref<1x512xf32, #tpu.memory_space<vmem>>, vector<1x512xf32>
    tpu.vector_store %arg14[%c0_34, %c0_35], %39 {strides = array<i32>} : memref<1x512xf32, #tpu.memory_space<vmem>>, vector<1x512xf32>,
    return
  }
  func.func @transform_0(%arg0: i32) -> (i32, i32) {
    %c0_i32 = arith.constant 0 : i32
    %c0_i32_0 = arith.constant 0 : i32
    return %c0_i32, %arg0 : i32, i32
  }
  func.func @transform_1(%arg0: i32) -> (i32, i32) {
    %c0_i32 = arith.constant 0 : i32
    %c0_i32_0 = arith.constant 0 : i32
    return %c0_i32, %arg0 : i32, i32
  }
  func.func @transform_2(%arg0: i32) -> (i32, i32) {
    %c0_i32 = arith.constant 0 : i32
    %c0_i32_0 = arith.constant 0 : i32
    return %c0_i32, %arg0 : i32, i32
  }
  func.func @transform_3(%arg0: i32) -> (i32, i32) {
    %c0_i32 = arith.constant 0 : i32
    %c0_i32_0 = arith.constant 0 : i32
    return %c0_i32, %arg0 : i32, i32
  }
  func.func @transform_4(%arg0: i32) -> (i32, i32) {
    %c0_i32 = arith.constant 0 : i32
    %c0_i32_0 = arith.constant 0 : i32
    %c0_i32_1 = arith.constant 0 : i32
    return %c0_i32, %c0_i32_0 : i32, i32
  }
  func.func @transform_5(%arg0: i32) -> (i32, i32) {
    %c0_i32 = arith.constant 0 : i32
    %c0_i32_0 = arith.constant 0 : i32
    %c0_i32_1 = arith.constant 0 : i32
    return %c0_i32, %c0_i32_0 : i32, i32
  }
  func.func @transform_6(%arg0: i32) -> (i32, i32) {
    %c0_i32 = arith.constant 0 : i32
    %c0_i32_0 = arith.constant 0 : i32
    %c0_i32_1 = arith.constant 0 : i32
    return %c0_i32, %c0_i32_0 : i32, i32
  }
  func.func @transform_7(%arg0: i32) -> (i32, i32) {
    %c0_i32 = arith.constant 0 : i32
    %c0_i32_0 = arith.constant 0 : i32
    %c0_i32_1 = arith.constant 0 : i32
    return %c0_i32, %c0_i32_0 : i32, i32
  }
  func.func @transform_8(%arg0: i32) -> (i32, i32) {
    %c0_i32 = arith.constant 0 : i32
    %c0_i32_0 = arith.constant 0 : i32
    %c0_i32_1 = arith.constant 0 : i32
    return %c0_i32, %c0_i32_0 : i32, i32
  }
  func.func @transform_9(%arg0: i32) -> (i32, i32) {
    %c0_i32 = arith.constant 0 : i32
    %c0_i32_0 = arith.constant 0 : i32
    %c0_i32_1 = arith.constant 0 : i32
    return %c0_i32, %c0_i32_0 : i32, i32
  }
  func.func @transform_10(%arg0: i32) -> (i32, i32) {
    %c0_i32 = arith.constant 0 : i32
    %c0_i32_0 = arith.constant 0 : i32
    %c0_i32_1 = arith.constant 0 : i32
    return %c0_i32, %c0_i32_0 : i32, i32
  }
  func.func @transform_11(%arg0: i32) -> (i32, i32) {
    %c0_i32 = arith.constant 0 : i32
    %c0_i32_0 = arith.constant 0 : i32
    %c0_i32_1 = arith.constant 0 : i32
    return %c0_i32, %c0_i32_0 : i32, i32
  }
  func.func @transform_12(%arg0: i32) -> (i32, i32) {
    %c0_i32 = arith.constant 0 : i32
    %c0_i32_0 = arith.constant 0 : i32
    %c0_i32_1 = arith.constant 0 : i32
    return %c0_i32, %c0_i32_0 : i32, i32
  }
  func.func @transform_13(%arg0: i32) -> (i32, i32) {
    %c0_i32 = arith.constant 0 : i32
    %c0_i32_0 = arith.constant 0 : i32
    return %c0_i32, %arg0 : i32, i32
  }
}

</mosaic_0001>

<bundles_post_ra>
// kernel: dual_mlp_score.1
= control target key start
LH: loop header
LB: loop body
LE: loop exit
PB: predicated region body
PF: predicated region fallthrough
CT: control target
= control target key end

     0   :  { %s1829_s27 = smov 0   ;;  %s1984_s0 = inlined_call_operand.vmem [shape: bf16[8,1024], index: 0, kind: input, shape index: {}]   ;;  %s1985_s1 = inlined_call_operand.vmem [shape: bf16[8,1024], index: 1, kind: input, shape index: {}]   ;;  %s1986_s2 = inlined_call_operand.vmem [shape: bf16[8,1024], index: 2, kind: input, shape index: {}]   ;;  %s1987_s3 = inlined_call_operand.vmem [shape: bf16[8,1024], index: 3, kind: input, shape index: {}]   ;;  %s1988_s4 = inlined_call_operand.vmem [shape: bf16[32,8], index: 4, kind: input, shape index: {}]   ;;  %s1989_s5 = inlined_call_operand.vmem [shape: bf16[32,8], index: 5, kind: input, shape index: {}]   ;;  %s1990_s6 = inlined_call_operand.vmem [shape: bf16[32,8], index: 6, kind: input, shape index: {}]   ;;  %s1991_s7 = inlined_call_operand.vmem [shape: bf16[32,8], index: 7, kind: input, shape index: {}]   ;;  %s1992_s8 = inlined_call_operand.vmem [shape: f32[32,1], index: 8, kind: input, shape index: {}]   ;;  %s1993_s9 = inlined_call_operand.vmem [shape: bf16[32,32], index: 9, kind: input, shape index: {}]   ;;  %s1994_s10 = inlined_call_operand.vmem [shape: f32[32,1], index: 10, kind: input, shape index: {}]   ;;  %s1995_s11 = inlined_call_operand.vmem [shape: bf16[1,32], index: 11, kind: input, shape index: {}]   ;;  %s1996_s12 = inlined_call_operand.<no memory space> [shape: f32[1,1], index: 12, kind: input, shape index: {}]   ;;  %s1997_s13 = inlined_call_operand.vmem [shape: f32[1,1024], index: 13, kind: output, shape index: {}]  }
   0x1   :  { %v18_v0 = vstv %s1996_s12 }
   0x2   :  { %19 = vst [vmem:[#allocation2] sm:$0x1] %v18_v0 }
   0x3 LB: > { %s1620_s28 = sadd.s32 4294967295, %s1752_s27   ;;  %p1624_p0 = scmp.ge.s32.totalorder %s1752_s27, 1  ;;  %s1752_s27 = sphi %s1829_s27, %s25_s27  }
   0x4   : > { %p423_p1 = scmp.lt.s32.totalorder %s1752_s27, 3 }
   0x6   : > { %p424_p2 = pnand %p1624_p0, %p423_p1 }
   0x7   : > { %s1625_s29 = sshll.u32 (!%p424_p2), %s1620_s28, 2 }
   0x8   : > { %427 = sbr.rel (%p424_p2) target bundleno = 756 (0x2f4), region = 72  ;;  %p482_p3 = scmp.lt.s32.totalorder (!%p424_p2), %s1625_s29, 7 }
   0xd   : > { %v1998_v1 = vmov 0   ;;  %s2002_s29 = smov (!%p482_p3, %s1625_s29), 7  ;;  %vm568_vm0 = vcmask 1043456   ;;  %v1708_v10 = vld [vmem:[%s1989_s5] sm:$0xff]   ;;  %vm561_vm1 = vcmask 64512   ;;  %v537_v19 = vld [vmem:[%s1992_s8 + $0x10] sm:$0xff] }
   0xe   : > { %613 = vmatprep.mubr.bf16.mxu0 %v1998_v1  ;;  %666 = vmatprep.mubr.bf16.mxu1 %v1998_v1  ;;  %s1844_s12 = sshll.u32 %s2002_s29, 2  ;;  %v535_v20 = vld [vmem:[%s1992_s8] sm:$0xff]  ;;  %v538_v25 = vld [vmem:[%s1992_s8 + $0x18] sm:$0xff]  ;;  %v536_v26 = vld [vmem:[%s1992_s8 + $0x8] sm:$0xff]  ;;  %vm1249_vm2 = vcmask 261120  }
   0xf   : > { %1702 = vset.pattern.permute.xlu0 %v1998_v1  ;;  %1703 = vset.pattern.permute.xlu1 %v1998_v1  ;;  %s491_s15 = scalar_lea.vmem %s1985_s1, %s1844_s12  ;;  %s485_s18 = scalar_lea.vmem %s1984_s0, %s1844_s12  ;;  %v1709_v27 = vld [vmem:[%s1989_s5 + $0x8] sm:$0xff]   ;;  %v1209_v28 = vld [vmem:[%s1994_s10 + $0x10] sm:$0xff]  ;;  %v1210_v29 = vld [vmem:[%s1994_s10 + $0x18] sm:$0xff] }
  0x10   : > { %v513_v2 = vld [vmem:[%s491_s15] sm:$0xff]  ;;  %v514_v3 = vld [vmem:[%s491_s15 + $0x8] sm:$0xff]  ;;  %s497_s21 = scalar_lea.vmem %s1986_s2, %s1844_s12  ;;  %1163 = vperm.xlu0 %1702, %v537_v19   ;;  %1153 = vperm.xlu1 %1703, %v535_v20   ;;  %s503_s25 = scalar_lea.vmem %s1987_s3, %s1844_s12 }
  0x11   : > { %v511_v4 = vld [vmem:[%s485_s18] sm:$0xff]  ;;  %v1637_v5 = vcombine.high %v513_v2, %v513_v2  ;;  %v1639_v6 = vcombine.high %v514_v3, %v514_v3  ;;  %v1636_v7 = vcombine.low %v513_v2, %v513_v2  ;;  %v1638_v8 = vcombine.low %v514_v3, %v514_v3  ;;  %v512_v9 = vld [vmem:[%s485_s18 + $0x8] sm:$0xff]  ;;  %s508_s18 = scalar_lea.vmem %s1997_s13, %s2002_s29 }
  0x12   : > { %v1649_v11 = vcombine.high %v511_v4, %v511_v4  ;;  %v1651_v12 = vcombine.high %v512_v9, %v512_v9  ;;  %v1648_v13 = vcombine.low %v511_v4, %v511_v4  ;;  %v1650_v14 = vcombine.low %v512_v9, %v512_v9  ;;  %v515_v17 = vld [vmem:[%s497_s21] sm:$0xff]  ;;  %v516_v18 = vld [vmem:[%s497_s21 + $0x8] sm:$0xff] }
  0x13   : > { %1640 = vmatprep.subr.msk.bf16.mxu0 %vm568_vm0, %v1637_v5  ;;  %1643 = vmatprep.subr.msk.bf16.mxu1 %vm568_vm0, %v1639_v6  ;;  %v570_v15 = vsel %vm568_vm0, %v1636_v7, 0  ;;  %v576_v16 = vsel %vm568_vm0, %v1638_v8, 0  ;;  %v1661_v23 = vcombine.high %v515_v17, %v515_v17  ;;  %v1663_v24 = vcombine.high %v516_v18, %v516_v18  ;;  %v1207_v32 = vld [vmem:[%s1994_s10] sm:$0xff]  ;;  %v1208_v33 = vld [vmem:[%s1994_s10 + $0x8] sm:$0xff] }
  0x14   : > { %596 = vmatpush1.bf16.msra.mxu0 %v570_v15  ;;  %649 = vmatpush1.bf16.msra.mxu1 %v576_v16  ;;  %v714_v21 = vsel %vm568_vm0, %v1648_v13, 0  ;;  %v720_v22 = vsel %vm568_vm0, %v1650_v14, 0  ;;  %v1660_v30 = vcombine.low %v515_v17, %v515_v17  ;;  %v1662_v31 = vcombine.low %v516_v18, %v516_v18  ;;  %v1714_v34 = vld [vmem:[%s1988_s4] sm:$0xff]   ;;  %v518_v36 = vld [vmem:[%s503_s25 + $0x8] sm:$0xff] }
  0x15   : > { %1652 = vmatprep.subr.msk.bf16.mxu0 %vm568_vm0, %v1649_v11  ;;  %1655 = vmatprep.subr.msk.bf16.mxu1 %vm568_vm0, %v1651_v12  ;;  %v517_v35 = vld [vmem:[%s503_s25] sm:$0xff]  ;;  %v1675_v40 = vcombine.high %v518_v36, %v518_v36  ;;  %v1715_v42 = vld [vmem:[%s1988_s4 + $0x8] sm:$0xff]   ;;  %v1674_v44 = vcombine.low %v518_v36, %v518_v36 }
  0x16   : > { %1168 = vperm.xlu0 %1702, %v538_v25   ;;  %1158 = vperm.xlu1 %1703, %v536_v26   ;;  %v858_v37 = vsel %vm568_vm0, %v1660_v30, 0  ;;  %v864_v38 = vsel %vm568_vm0, %v1662_v31, 0  ;;  %v1673_v39 = vcombine.high %v517_v35, %v517_v35  ;;  %v540_v41 = vld [vmem:[#allocation2] sm:$0x1]  ;;  %v1672_v43 = vcombine.low %v517_v35, %v517_v35  ;;  %v1721_v48 = vld [vmem:[%s1990_s6 + $0x8] sm:$0xff]  }
  0x17   : > { %1641 = vmatmul.mubr.msk.bf16.vlgmr.msra.gmra.mxu0 %vm561_vm1, %v1708_v10  ;;  %1644 = vmatmul.mubr.msk.bf16.vlgmr.msra.gmra.mxu1 %vm561_vm1, %v1708_v10  ;;  %v1720_v45 = vld [vmem:[%s1990_s6] sm:$0xff]   ;;  %v1024_v47 = vsel %vm568_vm0, %v1674_v44, 0  ;;  %v1727_v50 = vld [vmem:[%s1991_s7 + $0x8] sm:$0xff]  }
  0x18   : > { %623 = vmatprep.mubr.bf16.mxu0 %v1998_v1  ;;  %676 = vmatprep.mubr.bf16.mxu1 %v1998_v1  ;;  %v1018_v46 = vsel %vm568_vm0, %v1672_v43, 0  ;;  %v1726_v49 = vld [vmem:[%s1991_s7] sm:$0xff]  }
  0x19   : > { %740 = vmatpush1.bf16.msra.mxu0 %v714_v21  ;;  %793 = vmatpush1.bf16.msra.mxu1 %v720_v22 }
  0x1a   : > { %1664 = vmatprep.subr.msk.bf16.mxu0 %vm568_vm0, %v1661_v23  ;;  %1667 = vmatprep.subr.msk.bf16.mxu1 %vm568_vm0, %v1663_v24 }
  0x1b   : > { %1231 = vperm.xlu0 %1702, %v1209_v28   ;;  %1236 = vperm.xlu1 %1703, %v1210_v29  }
  0x1f   : > { %1642 = vmatmul.mubr.msk.bf16.gmra.mxu0 %vm561_vm1, %v1709_v27  ;;  %1645 = vmatmul.mubr.msk.bf16.gmra.mxu1 %vm561_vm1, %v1709_v27 }
  0x20   : > { %757 = vmatprep.mubr.bf16.mxu0 %v1998_v1  ;;  %810 = vmatprep.mubr.bf16.mxu1 %v1998_v1 }
  0x21   : > { %1221 = vperm.xlu0 %1702, %v1207_v32   ;;  %1226 = vperm.xlu1 %1703, %v1208_v33  }
  0x25   : > { %1388 = vperm.xlu0 %1702, %v540_v41  }
  0x27   : > { %1653 = vmatmul.mubr.msk.bf16.vlgmr.msra.gmra.mxu0 %vm561_vm1, %v1714_v34  ;;  %1656 = vmatmul.mubr.msk.bf16.vlgmr.msra.gmra.mxu1 %vm561_vm1, %v1714_v34 }
  0x28   : > { %767 = vmatprep.mubr.bf16.mxu0 %v1998_v1  ;;  %820 = vmatprep.mubr.bf16.mxu1 %v1998_v1 }
  0x29   : > { %884 = vmatpush1.bf16.msra.mxu0 %v858_v37  ;;  %937 = vmatpush1.bf16.msra.mxu1 %v864_v38 }
  0x2a   : > { %1676 = vmatprep.subr.msk.bf16.mxu0 %vm568_vm0, %v1673_v39  ;;  %1679 = vmatprep.subr.msk.bf16.mxu1 %vm568_vm0, %v1675_v40 }
  0x2f   : > { %1654 = vmatmul.mubr.msk.bf16.gmra.mxu0 %vm561_vm1, %v1715_v42  ;;  %1657 = vmatmul.mubr.msk.bf16.gmra.mxu1 %vm561_vm1, %v1715_v42 }
  0x30   : > { %901 = vmatprep.mubr.bf16.mxu0 %v1998_v1  ;;  %954 = vmatprep.mubr.bf16.mxu1 %v1998_v1 }
  0x37   : > { %1665 = vmatmul.mubr.msk.bf16.vlgmr.msra.gmra.mxu0 %vm561_vm1, %v1720_v45  ;;  %1668 = vmatmul.mubr.msk.bf16.vlgmr.msra.gmra.mxu1 %vm561_vm1, %v1720_v45 }
  0x38   : > { %911 = vmatprep.mubr.bf16.mxu0 %v1998_v1  ;;  %964 = vmatprep.mubr.bf16.mxu1 %v1998_v1 }
  0x39   : > { %1044 = vmatpush1.bf16.msra.mxu0 %v1018_v46  ;;  %1097 = vmatpush1.bf16.msra.mxu1 %v1024_v47 }
  0x3f   : > { %1666 = vmatmul.mubr.msk.bf16.gmra.mxu0 %vm561_vm1, %v1721_v48  ;;  %1669 = vmatmul.mubr.msk.bf16.gmra.mxu1 %vm561_vm1, %v1721_v48 }
  0x40   : > { %1061 = vmatprep.mubr.bf16.mxu0 %v1998_v1  ;;  %1114 = vmatprep.mubr.bf16.mxu1 %v1998_v1 }
  0x47   : > { %1677 = vmatmul.mubr.msk.bf16.vlgmr.msra.gmra.mxu0 %vm561_vm1, %v1726_v49  ;;  %1680 = vmatmul.mubr.msk.bf16.vlgmr.msra.gmra.mxu1 %vm561_vm1, %v1726_v49 }
  0x48   : > { %1071 = vmatprep.mubr.bf16.mxu0 %v1998_v1  ;;  %1124 = vmatprep.mubr.bf16.mxu1 %v1998_v1 }
  0x4f   : > { %1678 = vmatmul.mubr.msk.bf16.gmra.mxu0 %vm561_vm1, %v1727_v50  ;;  %1681 = vmatmul.mubr.msk.bf16.gmra.mxu1 %vm561_vm1, %v1727_v50 }
  0x50   : > { %1288 = vmatprep.mubr.bf16.mxu0 %v1998_v1  ;;  %1341 = vmatprep.mubr.bf16.mxu1 %v1998_v1 }
  0xd7   : > { %v615_v51 = vpop.f32.mrf.mxu0  ;;  %v668_v52 = vpop.f32.mrf.mxu1 }
  0xd9   : > { %v617_v53 = vpop.f32.mrf.mxu0  ;;  %v670_v54 = vpop.f32.mrf.mxu1 }
  0xdb   : > { %v619_v55 = vpop.f32.mrf.mxu0  ;;  %v672_v56 = vpop.f32.mrf.mxu1 }
  0xdd   : > { %v621_v57 = vpop.f32.mrf.mxu0  ;;  %v674_v58 = vpop.f32.mrf.mxu1 }
  0xdf   : > { %v625_v59 = vpop.f32.mrf.mxu0  ;;  %v678_v60 = vpop.f32.mrf.mxu1 }
  0xe1   : > { %v627_v61 = vpop.f32.mrf.mxu0  ;;  %v680_v62 = vpop.f32.mrf.mxu1 }
  0xe3   : > { %v629_v63 = vpop.f32.mrf.mxu0  ;;  %v682_v0 = vpop.f32.mrf.mxu1 }
  0xe5   : > { %v631_v2 = vpop.f32.mrf.mxu0  ;;  %v684_v3 = vpop.f32.mrf.mxu1 }
  0xe7   : > { %v759_v4 = vpop.f32.mrf.mxu0  ;;  %v812_v5 = vpop.f32.mrf.mxu1 }
  0xe8   : > { %v760_v38 = vadd.f32 %v759_v4, %v615_v51  ;;  %v813_v39 = vadd.f32 %v812_v5, %v668_v52 }
  0xe9   : > { %v761_v6 = vpop.f32.mrf.mxu0  ;;  %v814_v7 = vpop.f32.mrf.mxu1 }
  0xea   : > { %v762_v42 = vadd.f32 %v761_v6, %v617_v53  ;;  %v815_v43 = vadd.f32 %v814_v7, %v670_v54 }
  0xeb   : > { %v763_v8 = vpop.f32.mrf.mxu0  ;;  %v816_v9 = vpop.f32.mrf.mxu1 }
  0xec   : > { %v764_v44 = vadd.f32 %v763_v8, %v619_v55  ;;  %v817_v45 = vadd.f32 %v816_v9, %v672_v56 }
  0xed   : > { %v765_v10 = vpop.f32.mrf.mxu0  ;;  %v818_v11 = vpop.f32.mrf.mxu1 }
  0xee   : > { %v766_v46 = vadd.f32 %v765_v10, %v621_v57  ;;  %v819_v47 = vadd.f32 %v818_v11, %v674_v58  ;;  %v1164_v11 = vpop.permute.xlu0 %1163  ;;  %v1154_v58 = vpop.permute.xlu1 %1153 }
  0xef   : > { %v769_v12 = vpop.f32.mrf.mxu0  ;;  %v822_v13 = vpop.f32.mrf.mxu1 }
  0xf0   : > { %v770_v48 = vadd.f32 %v769_v12, %v625_v59  ;;  %v823_v49 = vadd.f32 %v822_v13, %v678_v60 }
  0xf1   : > { %v771_v14 = vpop.f32.mrf.mxu0  ;;  %v824_v15 = vpop.f32.mrf.mxu1 }
  0xf2   : > { %v772_v4 = vadd.f32 %v771_v14, %v627_v61  ;;  %v825_v51 = vadd.f32 %v824_v15, %v680_v62 }
  0xf3   : > { %v773_v16 = vpop.f32.mrf.mxu0  ;;  %v826_v17 = vpop.f32.mrf.mxu1 }
  0xf4   : > { %v774_v5 = vadd.f32 %v773_v16, %v629_v63  ;;  %v827_v52 = vadd.f32 %v826_v17, %v682_v0 }
  0xf5   : > { %v775_v18 = vpop.f32.mrf.mxu0  ;;  %v828_v19 = vpop.f32.mrf.mxu1 }
  0xf6   : > { %v776_v6 = vadd.f32 %v775_v18, %v631_v2  ;;  %v829_v53 = vadd.f32 %v828_v19, %v684_v3 }
  0xf7   : > { %v903_v20 = vpop.f32.mrf.mxu0  ;;  %v956_v21 = vpop.f32.mrf.mxu1 }
  0xf8   : > { %v975_v7 = vadd.f32 %v903_v20, %v760_v38  ;;  %v977_v54 = vadd.f32 %v956_v21, %v813_v39 }
  0xf9   : > { %v905_v22 = vpop.f32.mrf.mxu0  ;;  %v958_v23 = vpop.f32.mrf.mxu1 }
  0xfa   : > { %v976_v9 = vadd.f32 %v905_v22, %v762_v42  ;;  %v978_v56 = vadd.f32 %v958_v23, %v815_v43 }
  0xfb   : > { %v907_v24 = vpop.f32.mrf.mxu0  ;;  %v960_v25 = vpop.f32.mrf.mxu1 }
  0xfc   : > { %v979_v10 = vadd.f32 %v907_v24, %v764_v44  ;;  %v981_v57 = vadd.f32 %v960_v25, %v817_v45 }
  0xfd   : > { %v909_v26 = vpop.f32.mrf.mxu0  ;;  %v962_v27 = vpop.f32.mrf.mxu1 }
  0xfe   : > { %v980_v59 = vadd.f32 %v909_v26, %v766_v46  ;;  %v982_v60 = vadd.f32 %v962_v27, %v819_v47 }
  0xff   : > { %v913_v28 = vpop.f32.mrf.mxu0  ;;  %v966_v29 = vpop.f32.mrf.mxu1 }
 0x100   : > { %v983_v12 = vadd.f32 %v913_v28, %v770_v48  ;;  %v985_v13 = vadd.f32 %v966_v29, %v823_v49 }
 0x101   : > { %v915_v30 = vpop.f32.mrf.mxu0  ;;  %v968_v31 = vpop.f32.mrf.mxu1 }
 0x102   : > { %v984_v63 = vadd.f32 %v915_v30, %v772_v4  ;;  %v986_v0 = vadd.f32 %v968_v31, %v825_v51  ;;  %v1169_v30 = vpop.permute.xlu0 %1168 }
 0x103   : > { %v917_v32 = vpop.f32.mrf.mxu0  ;;  %v970_v33 = vpop.f32.mrf.mxu1 }
 0x104   : > { %v987_v2 = vadd.f32 %v917_v32, %v774_v5  ;;  %v989_v3 = vadd.f32 %v970_v33, %v827_v52  ;;  %v1159_v33 = vpop.permute.xlu1 %1158 }
 0x105   : > { %v919_v34 = vpop.f32.mrf.mxu0  ;;  %v972_v35 = vpop.f32.mrf.mxu1 }
 0x106   : > { %v988_v14 = vadd.f32 %v919_v34, %v776_v6  ;;  %v990_v15 = vadd.f32 %v972_v35, %v829_v53 }
 0x107   : > { %v1063_v36 = vpop.f32.mrf.mxu0  ;;  %v1116_v37 = vpop.f32.mrf.mxu1 }
 0x108   : > { %v1135_v20 = vadd.f32 %v1063_v36, %v975_v7  ;;  %v1137_v21 = vadd.f32 %v1116_v37, %v977_v54 }
 0x109   : > { %v1065_v40 = vpop.f32.mrf.mxu0  ;;  %v1118_v41 = vpop.f32.mrf.mxu1 }
 0x10a   : > { %v1136_v22 = vadd.f32 %v1065_v40, %v976_v9  ;;  %v1138_v23 = vadd.f32 %v1118_v41, %v978_v56  ;;  %v1171_v9 = vadd.f32 %v1154_v58, %v1135_v20  ;;  %v1173_v56 = vadd.f32 %v1154_v58, %v1137_v21 }
 0x10b   : > { %v1067_v50 = vpop.f32.mrf.mxu0  ;;  %v1120_v1 = vpop.f32.mrf.mxu1 }
 0x10c   : > { %v1139_v31 = vadd.f32 %v1067_v50, %v979_v10  ;;  %v1141_v32 = vadd.f32 %v1120_v1, %v981_v57  ;;  %v1172_v46 = vadd.f32 %v1154_v58, %v1136_v22  ;;  %v1174_v47 = vadd.f32 %v1154_v58, %v1138_v23 }
 0x10d   : > { %v1069_v8 = vpop.f32.mrf.mxu0  ;;  %v1122_v55 = vpop.f32.mrf.mxu1 }
 0x10e   : > { %v1140_v16 = vadd.f32 %v1069_v8, %v980_v59  ;;  %v1142_v17 = vadd.f32 %v1122_v55, %v982_v60  ;;  %v1175_v4 = vadd.f32 %v1159_v33, %v1139_v31  ;;  %v1177_v50 = vadd.f32 %v1159_v33, %v1141_v32 }
 0x10f   : > { %v1073_v61 = vpop.f32.mrf.mxu0  ;;  %v1126_v62 = vpop.f32.mrf.mxu1  ;;  %v1188_v59 = vmax.f32 %v1172_v46, 0.0  ;;  %v1190_v60 = vmax.f32 %v1174_v47, 0.0 }
 0x110   : > { %v1143_v24 = vadd.f32 %v1073_v61, %v983_v12  ;;  %v1145_v25 = vadd.f32 %v1126_v62, %v985_v13  ;;  %v1176_v38 = vadd.f32 %v1159_v33, %v1140_v16  ;;  %v1178_v39 = vadd.f32 %v1159_v33, %v1142_v17  ;;  %v1728_v16 = vld [vmem:[%s1993_s9] sm:$0xff]  }
 0x111   : > { %v1075_v18 = vpop.f32.mrf.mxu0  ;;  %v1128_v19 = vpop.f32.mrf.mxu1  ;;  %v1191_v13 = vmax.f32 %v1175_v4, 0.0  ;;  %v1193_v61 = vmax.f32 %v1177_v50, 0.0  ;;  %v2000_v17 = vmov 0  }
 0x112   : > { %v1144_v26 = vadd.f32 %v1075_v18, %v984_v63  ;;  %v1146_v27 = vadd.f32 %v1128_v19, %v986_v0  ;;  %v1179_v48 = vadd.f32 %v1164_v11, %v1143_v24  ;;  %v1181_v49 = vadd.f32 %v1164_v11, %v1145_v25  ;;  %v1729_v18 = vld [vmem:[%s1993_s9 + $0x8] sm:$0xff]   ;;  %v1237_v25 = vpop.permute.xlu1 %1236 }
 0x113   : > { %v1077_v28 = vpop.f32.mrf.mxu0  ;;  %v1130_v29 = vpop.f32.mrf.mxu1  ;;  %v1192_v5 = vmax.f32 %v1176_v38, 0.0  ;;  %v1194_v52 = vmax.f32 %v1178_v39, 0.0 }
 0x114   : > { %v1147_v34 = vadd.f32 %v1077_v28, %v987_v2  ;;  %v1149_v35 = vadd.f32 %v1130_v29, %v989_v3  ;;  %v1180_v42 = vadd.f32 %v1164_v11, %v1144_v26  ;;  %v1182_v43 = vadd.f32 %v1164_v11, %v1146_v27  ;;  %v1232_v28 = vpop.permute.xlu0 %1231 }
 0x115   : > { %v1079_v36 = vpop.f32.mrf.mxu0  ;;  %v1132_v37 = vpop.f32.mrf.mxu1  ;;  %v1195_v10 = vmax.f32 %v1179_v48, 0.0  ;;  %v1197_v57 = vmax.f32 %v1181_v49, 0.0  ;;  %v1212_v0 = vpack.c.bf16 %v1192_v5, %v1188_v59  ;;  %v1214_v2 = vpack.c.bf16 %v1194_v52, %v1190_v60 }
 0x116   : > { %v1183_v40 = vadd.f32 %v1169_v30, %v1147_v34  ;;  %v1185_v41 = vadd.f32 %v1169_v30, %v1149_v35  ;;  %v1148_v44 = vadd.f32 %v1079_v36, %v988_v14  ;;  %v1150_v45 = vadd.f32 %v1132_v37, %v990_v15  ;;  %v1227_v33 = vpop.permute.xlu1 %1226 }
 0x117   : > { %v1196_v7 = vmax.f32 %v1180_v42, 0.0  ;;  %v1198_v54 = vmax.f32 %v1182_v43, 0.0  ;;  %v1187_v3 = vmax.f32 %v1171_v9, 0.0  ;;  %v1189_v14 = vmax.f32 %v1173_v56, 0.0 }
 0x118   : > { %v1184_v1 = vadd.f32 %v1169_v30, %v1148_v44  ;;  %v1186_v51 = vadd.f32 %v1169_v30, %v1150_v45  ;;  %v1199_v6 = vmax.f32 %v1183_v40, 0.0  ;;  %v1201_v53 = vmax.f32 %v1185_v41, 0.0  ;;  %v1222_v42 = vpop.permute.xlu0 %1221 }
 0x119   : > { %v1211_v58 = vpack.c.bf16 %v1191_v13, %v1187_v3  ;;  %v1213_v15 = vpack.c.bf16 %v1193_v61, %v1189_v14 }
 0x11a   : > { %v1200_v8 = vmax.f32 %v1184_v1, 0.0  ;;  %v1202_v55 = vmax.f32 %v1186_v51, 0.0  ;;  %v1215_v62 = vpack.c.bf16 %v1199_v6, %v1195_v10  ;;  %v1217_v63 = vpack.c.bf16 %v1201_v53, %v1197_v57 }
 0x11c   : > { %v1216_v12 = vpack.c.bf16 %v1200_v8, %v1196_v7  ;;  %v1218_v11 = vpack.c.bf16 %v1202_v55, %v1198_v54 }
 0x11e   : > { %1268 = vmatprep.subr.bf16.mxu0 %v1216_v12  ;;  %1321 = vmatprep.subr.bf16.mxu1 %v1218_v11 }
 0x11f   : > { %1269 = vmatpush1.bf16.msra.mxu0 %v1215_v62  ;;  %1322 = vmatpush1.bf16.msra.mxu1 %v1217_v63 }
 0x120   : > { %1270 = vmatprep.subr.bf16.mxu0 %v1212_v0  ;;  %1323 = vmatprep.subr.bf16.mxu1 %v1214_v2 }
 0x123   : > { %1271 = vmatpush1.bf16.msra.mxu0 %v1211_v58  ;;  %1324 = vmatpush1.bf16.msra.mxu1 %v1213_v15  ;;  %v539_v15 = vld [vmem:[%s1995_s11] sm:$0x1] }
 0x126   : > { %1684 = vmatmul.mubr.msk.bf16.vlgmr.msra.gmra.mxu0 %vm1249_vm2, %v1728_v16  ;;  %1686 = vmatmul.mubr.msk.bf16.vlgmr.msra.gmra.mxu1 %vm1249_vm2, %v1728_v16  ;;  %v1391_v16 = vlaneseq }
 0x127   : > { %1298 = vmatprep.mubr.bf16.mxu0 %v2000_v17  ;;  %1351 = vmatprep.mubr.bf16.mxu1 %v2000_v17 }
 0x128   : > { %vm1531_vm3 = vcmp.lt.s32.totalorder %v1391_v16, 512 }
 0x12e   : > { %1685 = vmatmul.mubr.msk.bf16.gmra.mxu0 %vm1249_vm2, %v1729_v18  ;;  %1687 = vmatmul.mubr.msk.bf16.gmra.mxu1 %vm1249_vm2, %v1729_v18 }
 0x12f   : > { %1430 = vmatprep.mubr.bf16.mxu0 %v2000_v17  ;;  %1471 = vmatprep.mubr.bf16.mxu1 %v2000_v17  ;;  %v1392_v17 = vshrl.u32 %v1391_v16, 7 }
 0x131   : > { %v1393_v18 = vsub.s32 0, %v1392_v17 }
 0x1e6   : > { %v1290_v19 = vpop.f32.mrf.mxu0  ;;  %v1343_v20 = vpop.f32.mrf.mxu1 }
 0x1e7   : > { %v1291_v55 = vadd.f32 %v1290_v19, %v1222_v42  ;;  %v1344_v9 = vadd.f32 %v1343_v20, %v1222_v42  ;;  %v1389_v19 = vpop.permute.xlu0 %1388 }
 0x1e8   : > { %v1292_v21 = vpop.f32.mrf.mxu0  ;;  %v1345_v22 = vpop.f32.mrf.mxu1  ;;  %v1394_v20 = vrot.slane %v1389_v19, %v1393_v18 }
 0x1e9   : > { %v1293_v41 = vadd.f32 %v1292_v21, %v1222_v42  ;;  %v1346_v44 = vadd.f32 %v1345_v22, %v1222_v42  ;;  %v1362_v2 = vmax.f32 %v1291_v55, 0.0  ;;  %v1364_v3 = vmax.f32 %v1344_v9, 0.0 }
 0x1ea   : > { %v1294_v23 = vpop.f32.mrf.mxu0  ;;  %v1347_v24 = vpop.f32.mrf.mxu1 }
 0x1eb   : > { %v1295_v49 = vadd.f32 %v1294_v23, %v1227_v33  ;;  %v1348_v4 = vadd.f32 %v1347_v24, %v1227_v33  ;;  %v1363_v57 = vmax.f32 %v1293_v41, 0.0  ;;  %v1365_v59 = vmax.f32 %v1346_v44, 0.0 }
 0x1ec   : > { %v1296_v26 = vpop.f32.mrf.mxu0  ;;  %v1349_v27 = vpop.f32.mrf.mxu1 }
 0x1ed   : > { %v1297_v34 = vadd.f32 %v1296_v26, %v1227_v33  ;;  %v1350_v35 = vadd.f32 %v1349_v27, %v1227_v33  ;;  %v1366_v11 = vmax.f32 %v1295_v49, 0.0  ;;  %v1368_v13 = vmax.f32 %v1348_v4, 0.0 }
 0x1ee   : > { %v1300_v29 = vpop.f32.mrf.mxu0  ;;  %v1353_v30 = vpop.f32.mrf.mxu1  ;;  %v1755_v49 = vmov 1966171168  }
 0x1ef   : > { %v1301_v45 = vadd.f32 %v1300_v29, %v1232_v28  ;;  %v1354_v46 = vadd.f32 %v1353_v30, %v1232_v28  ;;  %v1367_v51 = vmax.f32 %v1297_v34, 0.0  ;;  %v1369_v5 = vmax.f32 %v1350_v35, 0.0 }
 0x1f0   : > { %v1302_v31 = vpop.f32.mrf.mxu0  ;;  %v1355_v32 = vpop.f32.mrf.mxu1  ;;  %v1378_v14 = vpack.c.bf16 %v1366_v11, %v1362_v2  ;;  %v1380_v58 = vpack.c.bf16 %v1368_v13, %v1364_v3  ;;  %v1507_v4 = vunpack.c.l.s4 %v1755_v49 }
 0x1f1   : > { %v1303_v43 = vadd.f32 %v1302_v31, %v1232_v28  ;;  %v1356_v36 = vadd.f32 %v1355_v32, %v1232_v28  ;;  %v1370_v56 = vmax.f32 %v1301_v45, 0.0  ;;  %v1372_v10 = vmax.f32 %v1354_v46, 0.0 }
 0x1f2   : > { %v1304_v38 = vpop.f32.mrf.mxu0  ;;  %v1357_v39 = vpop.f32.mrf.mxu1  ;;  %v1379_v63 = vpack.c.bf16 %v1367_v51, %v1363_v57  ;;  %v1381_v0 = vpack.c.bf16 %v1369_v5, %v1365_v59 }
 0x1f3   : > { %v1305_v37 = vadd.f32 %v1304_v38, %v1237_v25  ;;  %v1358_v40 = vadd.f32 %v1357_v39, %v1237_v25  ;;  %v1371_v53 = vmax.f32 %v1303_v43, 0.0  ;;  %v1373_v7 = vmax.f32 %v1356_v36, 0.0 }
 0x1f4   : > { %v1306_v47 = vpop.f32.mrf.mxu0  ;;  %v1359_v48 = vpop.f32.mrf.mxu1 }
 0x1f5   : > { %v1307_v50 = vadd.f32 %v1306_v47, %v1237_v25  ;;  %v1360_v1 = vadd.f32 %v1359_v48, %v1237_v25  ;;  %v1374_v52 = vmax.f32 %v1305_v37, 0.0  ;;  %v1376_v6 = vmax.f32 %v1358_v40, 0.0 }
 0x1f7   : > { %v1375_v54 = vmax.f32 %v1307_v50, 0.0  ;;  %v1377_v8 = vmax.f32 %v1360_v1, 0.0  ;;  %v1382_v61 = vpack.c.bf16 %v1374_v52, %v1370_v56  ;;  %v1384_v62 = vpack.c.bf16 %v1376_v6, %v1372_v10 }
 0x1f8   : > { %v1508_v50 = vunpack.c.0.s8 %v1507_v4 }
 0x1f9   : > { %v1383_v60 = vpack.c.bf16 %v1375_v54, %v1371_v53  ;;  %v1385_v12 = vpack.c.bf16 %v1377_v8, %v1373_v7 }
 0x1fa   : > { %v1511_v5 = vsub.s32 %v1508_v50, %v1392_v17 }
 0x1fb   : > { %1410 = vmatprep.subr.bf16.mxu0 %v1383_v60  ;;  %1451 = vmatprep.subr.bf16.mxu1 %v1385_v12 }
 0x1fc   : > { %1411 = vmatpush1.bf16.msra.mxu0 %v1382_v61  ;;  %1452 = vmatpush1.bf16.msra.mxu1 %v1384_v62 }
 0x1fd   : > { %1412 = vmatprep.subr.bf16.mxu0 %v1379_v63  ;;  %1453 = vmatprep.subr.bf16.mxu1 %v1381_v0 }
 0x200   : > { %1413 = vmatpush1.bf16.msra.mxu0 %v1378_v14  ;;  %1454 = vmatpush1.bf16.msra.mxu1 %v1380_v58 }
 0x203   : > { %1688 = vmatmul.mubr.msk.bf16.vlgmr.msra.gmra.mxu0 %vm1249_vm2, %v539_v15  ;;  %1689 = vmatmul.mubr.msk.bf16.vlgmr.msra.gmra.mxu1 %vm1249_vm2, %v539_v15 }
 0x2c3   : > { %v1432_v21 = vpop.f32.mrf.mxu0  ;;  %v1473_v22 = vpop.f32.mrf.mxu1 }
 0x2c4   : > { %v1433_v23 = vadd.f32 %v1432_v21, %v1394_v20  ;;  %v1474_v24 = vadd.f32 %v1473_v22, %v1394_v20 }
 0x2c5   : > { %v1434_v25 = vpop.f32.mrf.mxu0  ;;  %v1475_v26 = vpop.f32.mrf.mxu1 }
 0x2c6   : > { %v1480_v27 = vsub.f32 0.0, %v1433_v23  ;;  %v1482_v28 = vsub.f32 0.0, %v1474_v24  ;;  %v1435_v29 = vadd.f32 %v1434_v25, %v1394_v20  ;;  %v1476_v30 = vadd.f32 %v1475_v26, %v1394_v20 }
 0x2c7   : > { %v1436_v31 = vpop.f32.mrf.mxu0  ;;  %v1477_v32 = vpop.f32.mrf.mxu1 }
 0x2c8   : > { %v1484_v33 = vmul.f32 1.442695, %v1480_v27  ;;  %v1488_v34 = vmul.f32 1.442695, %v1482_v28  ;;  %v1481_v35 = vsub.f32 0.0, %v1435_v29  ;;  %v1483_v38 = vsub.f32 0.0, %v1476_v30 }
 0x2c9   : > { %v1437_v39 = vpop.f32.mrf.mxu0  ;;  %v1478_v42 = vpop.f32.mrf.mxu1 }
 0x2ca   : > { %1730 = vpow2.f32 %v1484_v33  ;;  %v1486_v43 = vmul.f32 1.442695, %v1481_v35  ;;  %v1490_v36 = vmul.f32 1.442695, %v1483_v38 }
 0x2cb   : > { %1732 = vpow2.f32 %v1488_v34 }
 0x2cc   : > { %1734 = vpow2.f32 %v1486_v43 }
 0x2cd   : > { %1736 = vpow2.f32 %v1490_v36 }
 0x2d7   : > { %v1731_v37 = vpop.eup %1730 }
 0x2d8   : > { %v1733_v40 = vpop.eup %1732  ;;  %v1492_v41 = vadd.f32 1.0, %v1731_v37 }
 0x2d9   : > { %v1735_v44 = vpop.eup %1734  ;;  %v1494_v45 = vadd.f32 1.0, %v1733_v40 }
 0x2da   : > { %v1737_v46 = vpop.eup %1736  ;;  %1738 = vrcp.f32 %v1492_v41  ;;  %v1493_v47 = vadd.f32 1.0, %v1735_v44 }
 0x2db   : > { %1740 = vrcp.f32 %v1494_v45  ;;  %v1495_v48 = vadd.f32 1.0, %v1737_v46 }
 0x2dc   : > { %1742 = vrcp.f32 %v1493_v47 }
 0x2dd   : > { %1744 = vrcp.f32 %v1495_v48 }
 0x2e7   : > { %v1739_v1 = vpop.eup %1738 }
 0x2e8   : > { %v1741_v51 = vpop.eup %1740 }
 0x2e9   : > { %v1743_v52 = vpop.eup %1742 }
 0x2ea   : > { %v1745_v6 = vpop.eup %1744  ;;  %v1504_v53 = vcombine.low %v1739_v1, %v1743_v52 }
 0x2eb   : > { %v1505_v7 = vcombine.low %v1741_v51, %v1745_v6 }
 0x2ec   : > { %v1512_v54 = vrot.slane %v1504_v53, %v1511_v5 }
 0x2ed   : > { %v1519_v8 = vrot.slane %v1505_v7, %v1511_v5 }
 0x2ef   : > { %v1520_v55 = vcombine.low %v1512_v54, %v1519_v8 }
 0x2f1   : > { %v1527_v9 = vrot.slane %v1520_v55, %v1511_v5 }
 0x2f3   : > { %1533 = vst.msk [vmem:[%s508_s18] sm:$0xf] %vm1531_vm3, %v1527_v9 }
 0x2f4 PF: > { %s25_s27 = sadd.s32 1, %s1752_s27  }
 0x2f5   : > { %p22_p4 = scmp.ge.s32.totalorder %s25_s27, 4  }
 0x2f7   :  { %24 = sbr.rel (!%p22_p4) target bundleno = 3 (0x3), region = 111 }

</bundles_post_ra>
